<compile_context>
chip_gen: v5e
topology: v5e:2x2
jax: 0.10.0
libtpu: 0.0.40
codegen_flags: <defaults>
</compile_context>

<pallas_src>
import jax
import jax.numpy as jnp
from jax.experimental import pallas as pl
from jax.experimental.pallas import tpu as pltpu


# ----------------------------------------------------------------------------- kernel
def _mmoe_kernel(x_ref,
                 w1_ref, b1_ref, w2_ref, b2_ref,      # fused expert+gate weights (bf16/f32 bias)
                 seg_ref, expand_ref, collapse_ref,   # static 0/1 structural matrices (bf16)
                 out_ref):
    T = expand_ref.shape[0]          # num_tasks (static)
    EH2 = expand_ref.shape[-1]       # E * H2    (static)

    x = x_ref[...]                                                        # bf16 [TB, D]

    # --- fused layer 1: all experts + all gates in one lane-dense matmul ------
    u1 = jnp.dot(x, w1_ref[...], preferred_element_type=jnp.float32) + b1_ref[...]
    u1 = jnp.maximum(u1, 0.0)                                             # f32 [TB, E*H1+T*Hg]

    # --- fused layer 2: combined block-diagonal -> expert outputs + gate logits
    u2 = (jnp.dot(u1.astype(jnp.bfloat16), w2_ref[...],
                  preferred_element_type=jnp.float32) + b2_ref[...])      # f32 [TB, E*H2+T*E]

    h2 = jnp.maximum(u2[:, :EH2], 0.0)                                    # f32 [TB, E*H2]
    logits = u2[:, EH2:]                                                  # f32 [TB, T*E]

    # --- per-task softmax, whole-row: global max, exp once, segment-sum denom -
    m = jnp.max(logits, axis=-1, keepdims=True)                           # row-global max
    p = jnp.exp(logits - m)                                               # f32 [TB, T*E]
    denom = jnp.dot(p.astype(jnp.bfloat16), seg_ref[...],
                    preferred_element_type=jnp.float32)                   # [TB, T*E]
    denom = jnp.maximum(denom, 1e-30)                                     # underflow guard
    gate = (p * pl.reciprocal(denom, approx=True)).astype(jnp.bfloat16)   # [TB, T*E]

    # --- gated mixture: per-task expand / multiply / padded collapse ----------
    # intermediates stay [TB, E*H2]; padded collapse makes the final store full-width.
    acc = None
    for t in range(T):
        ge = jnp.dot(gate, expand_ref[t], preferred_element_type=jnp.float32)   # [TB, E*H2]
        w = (ge * h2).astype(jnp.bfloat16)                                       # [TB, E*H2]
        o = jnp.dot(w, collapse_ref[t], preferred_element_type=jnp.float32)      # [TB, OUT_PAD]
        acc = o if acc is None else acc + o
    out_ref[...] = acc.astype(out_ref.dtype)


# ----------------------------------------------------------------------------- packing
def _block_diag(blocks):
    """blocks: [N, r, c] -> block-diagonal [N*r, N*c] (wrapper-side, static)."""
    n, r, c = blocks.shape
    out = jnp.zeros((n * r, n * c), blocks.dtype)
    for i in range(n):
        out = out.at[i * r:(i + 1) * r, i * c:(i + 1) * c].set(blocks[i])
    return out


def pack_params(params, *, num_experts, num_tasks):
    """Fuse per-expert/per-task weights into lane-dense slabs + structural matrices (once)."""
    w1, b1, w2, b2, gw1, gb1, gw2, gb2 = params
    E, D, H1 = w1.shape
    H2 = w2.shape[-1]
    T, _, HG = gw1.shape
    assert E == num_experts and T == num_tasks
    mxu = jnp.bfloat16

    # fused layer-1 weights / biases: [D, E*H1 + T*Hg]
    w1cat = jnp.transpose(w1, (1, 0, 2)).reshape(D, E * H1)
    gw1cat = jnp.transpose(gw1, (1, 0, 2)).reshape(D, T * HG)
    w1all = jnp.concatenate([w1cat, gw1cat], axis=1).astype(mxu)
    b1all = jnp.concatenate([b1.reshape(1, E * H1), gb1.reshape(1, T * HG)], axis=1)

    # fused layer-2 combined block-diagonal: [[w2bd, 0], [0, gw2bd]]
    w2bd = _block_diag(w2)                                   # [E*H1, E*H2]
    gw2bd = _block_diag(gw2)                                 # [T*Hg, T*E]
    top = jnp.concatenate([w2bd, jnp.zeros((E * H1, T * E), w2bd.dtype)], axis=1)
    bot = jnp.concatenate([jnp.zeros((T * HG, E * H2), gw2bd.dtype), gw2bd], axis=1)
    w2all = jnp.concatenate([top, bot], axis=0).astype(mxu)  # [E*H1+T*Hg, E*H2+T*E]
    b2all = jnp.concatenate([b2.reshape(1, E * H2), gb2.reshape(1, T * E)], axis=1)

    # softmax segment-sum: [T*E, T*E], block of ones per task
    seg = _block_diag(jnp.ones((T, E, E), jnp.float32)).astype(mxu)

    # per-task expand: [T, T*E, E*H2],  expand[t, t*E+e, e*H2+h] = 1
    exp_e = jnp.repeat(jnp.eye(E, dtype=jnp.float32), H2, axis=1)        # [E, E*H2]
    expand = jnp.zeros((T, T * E, E * H2), jnp.float32)
    for t in range(T):
        expand = expand.at[t, t * E:(t + 1) * E, :].set(exp_e)
    expand = expand.astype(mxu)

    # per-task padded collapse: [T, E*H2, OUT_PAD], collapse[t, e*H2+h, t*H2+h] = 1
    out_pad = max(128, -(-(T * H2) // 128) * 128)
    blk = jnp.concatenate([jnp.eye(H2, dtype=jnp.float32)] * E, axis=0)  # [E*H2, H2]
    collapse = jnp.zeros((T, E * H2, out_pad), jnp.float32)
    for t in range(T):
        collapse = collapse.at[t, :, t * H2:(t + 1) * H2].set(blk)
    collapse = collapse.astype(mxu)

    return (w1all, b1all, w2all, b2all, seg, expand, collapse)


# ----------------------------------------------------------------------------- wrapper
def mmoe_forward(x, packed, *, num_experts, num_tasks, batch_tile=1024):
    """Single pallas_call. Returns [B, num_tasks, H2] (one slice + reshape in the wrapper)."""
    w1all, b1all, w2all, b2all, seg, expand, collapse = packed
    B, D = x.shape
    T = num_tasks
    H2 = expand.shape[-1] // num_experts
    OUT_PAD = collapse.shape[-1]

    # batch tiling: big tiles amortize per-step pipeline overhead; ensure >=2 grid steps
    # when the batch allows it so both v7x TensorCores participate ("parallel" axis).
    if B <= 8:
        TB = 8
    else:
        TB = min(batch_tile, -(-B // 2))
        TB = max(16, -(-TB // 16) * 16)        # sublane-friendly for the bf16 x tile
    n_blocks = -(-B // TB)
    B_pad = n_blocks * TB

    xb = x.astype(jnp.bfloat16)                # halve x HBM bytes; MXU operand anyway
    if B_pad != B:
        xb = jnp.pad(xb, ((0, B_pad - B), (0, 0)))

    def const(a):                              # resident weight: fetched once
        z = (0,) * a.ndim
        return pl.BlockSpec(a.shape, lambda i, _z=z: _z)

    out = pl.pallas_call(
        _mmoe_kernel,
        out_shape=jax.ShapeDtypeStruct((B_pad, OUT_PAD), jnp.float32),
        grid=(n_blocks,),
        in_specs=[
            pl.BlockSpec((TB, D), lambda i: (i, 0)),          # x: tiled over batch
            const(w1all), const(b1all), const(w2all), const(b2all),
            const(seg), const(expand), const(collapse),
        ],
        out_specs=pl.BlockSpec((TB, OUT_PAD), lambda i: (i, 0)),   # full-width (128n) stores
        compiler_params=pltpu.CompilerParams(
            dimension_semantics=("parallel",)),
    )(xb, w1all, b1all, w2all, b2all, seg, expand, collapse)

    return out[:B, :T * H2].reshape(B, T, H2)


# ----------------------------------------------------------------------------- reference
def mmoe_reference(x, params, *, num_experts, num_tasks):
    """Pure-JAX reference mirroring the PyTorch forward exactly (f32 throughout)."""
    w1, b1, w2, b2, gw1, gb1, gw2, gb2 = params
    experts = []
    for e in range(num_experts):
        h = jax.nn.relu(x @ w1[e] + b1[e])
        h = jax.nn.relu(h @ w2[e] + b2[e])
        experts.append(h)
    experts_output = jnp.stack(experts, axis=1)                    # [B, E, H2]
    outs = []
    for t in range(num_tasks):
        g = jax.nn.relu(x @ gw1[t] + gb1[t]) @ gw2[t] + gb2[t]
        g = jax.nn.softmax(g, axis=-1)                             # [B, E]
        outs.append(jnp.sum(g[:, :, None] * experts_output, axis=1))
    return outs


def init_params(key, *, num_experts, num_tasks, input_dim, h1, h2, hg):
    ks = jax.random.split(key, 8)
    scale = 0.05
    w1 = scale * jax.random.normal(ks[0], (num_experts, input_dim, h1), jnp.float32)
    b1 = scale * jax.random.normal(ks[1], (num_experts, h1), jnp.float32)
    w2 = scale * jax.random.normal(ks[2], (num_experts, h1, h2), jnp.float32)
    b2 = scale * jax.random.normal(ks[3], (num_experts, h2), jnp.float32)
    gw1 = scale * jax.random.normal(ks[4], (num_tasks, input_dim, hg), jnp.float32)
    gb1 = scale * jax.random.normal(ks[5], (num_tasks, hg), jnp.float32)
    gw2 = scale * jax.random.normal(ks[6], (num_tasks, hg, num_experts), jnp.float32)
    gb2 = scale * jax.random.normal(ks[7], (num_tasks, num_experts), jnp.float32)
    return (w1, b1, w2, b2, gw1, gb1, gw2, gb2)


if __name__ == "__main__":
    # Small MMoE config: 4 experts, 2 tasks, input_dim=32,
    # expert_hidden_units=[32, 32], gate_hidden_units=[32], relu activations,
    # net_dropout=0, batch_norm=False (inference semantics).
    NUM_EXPERTS, NUM_TASKS = 4, 2
    B, D, H1, H2, HG = 8, 32, 32, 32, 32

    key = jax.random.PRNGKey(0)
    kx, kp = jax.random.split(key)
    x = jax.random.normal(kx, (B, D), jnp.float32)
    params = init_params(kp, num_experts=NUM_EXPERTS, num_tasks=NUM_TASKS,
                         input_dim=D, h1=H1, h2=H2, hg=HG)
    packed = pack_params(params, num_experts=NUM_EXPERTS, num_tasks=NUM_TASKS)

    out = mmoe_forward(x, packed, num_experts=NUM_EXPERTS, num_tasks=NUM_TASKS)
    out = jax.block_until_ready(out)
    assert out.shape == (B, NUM_TASKS, H2)

    refs = mmoe_reference(x, params, num_experts=NUM_EXPERTS, num_tasks=NUM_TASKS)
    ref_stack = jnp.stack(refs, axis=1)                            # [B, T, H2]
    # tolerance covers bf16 MXU operands + the EUP approximate reciprocal in the softmax
    max_err = float(jnp.max(jnp.abs(out - ref_stack)))
    assert max_err < 5e-3, f"mismatch vs reference (max abs err {max_err})"

    print("KERNEL_OK")
</pallas_src>

<mosaic_0001>
module attributes {stable_mosaic.version = 11 : i64} {
  func.func @_mmoe_kernel(%arg0: i32, %arg1: memref<8x32xbf16, #tpu.memory_space<vmem>>, %arg2: memref<32x192xbf16, #tpu.memory_space<vmem>>, %arg3: memref<1x192xf32, #tpu.memory_space<vmem>>, %arg4: memref<192x136xbf16, #tpu.memory_space<vmem>>, %arg5: memref<1x136xf32, #tpu.memory_space<vmem>>, %arg6: memref<8x8xbf16, #tpu.memory_space<vmem>>, %arg7: memref<2x8x128xbf16, #tpu.memory_space<vmem>>, %arg8: memref<2x128x128xbf16, #tpu.memory_space<vmem>>, %arg9: memref<8x128xf32, #tpu.memory_space<vmem>>) attributes {dimension_semantics = [#tpu.dimension_semantics<parallel>], iteration_bounds = array<i64: 1>, scalar_prefetch = 0 : i64, scratch_operands = 0 : i64, tpu.core_type = #tpu.core_type<tc>, window_params = [{transform_indices = @transform_0, window_bounds = array<i64: 8, 32>}, {pipeline_mode = #tpu.pipeline_mode<synchronous>, transform_indices = @transform_1, window_bounds = array<i64: 32, 192>}, {pipeline_mode = #tpu.pipeline_mode<synchronous>, transform_indices = @transform_2, window_bounds = array<i64: 1, 192>}, {pipeline_mode = #tpu.pipeline_mode<synchronous>, transform_indices = @transform_3, window_bounds = array<i64: 192, 136>}, {pipeline_mode = #tpu.pipeline_mode<synchronous>, transform_indices = @transform_4, window_bounds = array<i64: 1, 136>}, {pipeline_mode = #tpu.pipeline_mode<synchronous>, transform_indices = @transform_5, window_bounds = array<i64: 8, 8>}, {pipeline_mode = #tpu.pipeline_mode<synchronous>, transform_indices = @transform_6, window_bounds = array<i64: 2, 8, 128>}, {pipeline_mode = #tpu.pipeline_mode<synchronous>, transform_indices = @transform_7, window_bounds = array<i64: 2, 128, 128>}, {transform_indices = @transform_8, window_bounds = array<i64: 8, 128>}]} {
    %c0 = arith.constant 0 : index
    %c0_0 = arith.constant 0 : index
    %0 = vector.load %arg1[%c0, %c0_0] : memref<8x32xbf16, #tpu.memory_space<vmem>>, vector<8x32xbf16>
    %c0_1 = arith.constant 0 : index
    %c0_2 = arith.constant 0 : index
    %1 = vector.load %arg2[%c0_1, %c0_2] : memref<32x192xbf16, #tpu.memory_space<vmem>>, vector<32x192xbf16>
    %cst = arith.constant dense<0.000000e+00> : vector<8x192xf32>
    %2 = tpu.matmul %0, %1, %cst {dimension_numbers = #tpu.dot_dimension_numbers<[1], [0], [0], [1], [0, 0, 1, 1], [], []>} : vector<8x32xbf16>, vector<32x192xbf16>, vector<8x192xf32> -> vector<8x192xf32>
    %c0_3 = arith.constant 0 : index
    %c0_4 = arith.constant 0 : index
    %3 = vector.load %arg3[%c0_3, %c0_4] : memref<1x192xf32, #tpu.memory_space<vmem>>, vector<1x192xf32>
    %4 = vector.broadcast %3 : vector<1x192xf32> to vector<8x192xf32>
    %5 = arith.addf %2, %4 : vector<8x192xf32>
    %cst_5 = arith.constant 0.000000e+00 : f32
    %6 = vector.broadcast %cst_5 : f32 to vector<8x192xf32>
    %7 = arith.maximumf %5, %6 : vector<8x192xf32>
    %8 = arith.truncf %7 : vector<8x192xf32> to vector<8x192xbf16>
    %c0_6 = arith.constant 0 : index
    %c0_7 = arith.constant 0 : index
    %9 = vector.load %arg4[%c0_6, %c0_7] : memref<192x136xbf16, #tpu.memory_space<vmem>>, vector<192x136xbf16>
    %cst_8 = arith.constant dense<0.000000e+00> : vector<8x136xf32>
    %10 = tpu.matmul %8, %9, %cst_8 {dimension_numbers = #tpu.dot_dimension_numbers<[1], [0], [0], [1], [0, 0, 1, 1], [], []>} : vector<8x192xbf16>, vector<192x136xbf16>, vector<8x136xf32> -> vector<8x136xf32>
    %c0_9 = arith.constant 0 : index
    %c0_10 = arith.constant 0 : index
    %11 = vector.load %arg5[%c0_9, %c0_10] : memref<1x136xf32, #tpu.memory_space<vmem>>, vector<1x136xf32>
    %12 = vector.broadcast %11 : vector<1x136xf32> to vector<8x136xf32>
    %13 = arith.addf %10, %12 : vector<8x136xf32>
    %14 = vector.extract_strided_slice %13 {offsets = [0, 0], sizes = [8, 128], strides = [1, 1]} : vector<8x136xf32> to vector<8x128xf32>
    %cst_11 = arith.constant 0.000000e+00 : f32
    %15 = vector.broadcast %cst_11 : f32 to vector<8x128xf32>
    %16 = arith.maximumf %14, %15 : vector<8x128xf32>
    %17 = vector.extract_strided_slice %13 {offsets = [0, 128], sizes = [8, 8], strides = [1, 1]} : vector<8x136xf32> to vector<8x8xf32>
    %cst_12 = arith.constant dense<0xFF800000> : vector<8xf32>
    %18 = vector.multi_reduction <maximumf>, %17, %cst_12 [1] : vector<8x8xf32> to vector<8xf32>
    %19 = vector.shape_cast %18 : vector<8xf32> to vector<8x1xf32>
    %20 = vector.broadcast %19 : vector<8x1xf32> to vector<8x8xf32>
    %21 = arith.subf %17, %20 : vector<8x8xf32>
    %22 = math.exp %21 : vector<8x8xf32>
    %23 = arith.truncf %22 : vector<8x8xf32> to vector<8x8xbf16>
    %c0_13 = arith.constant 0 : index
    %c0_14 = arith.constant 0 : index
    %24 = vector.load %arg6[%c0_13, %c0_14] : memref<8x8xbf16, #tpu.memory_space<vmem>>, vector<8x8xbf16>
    %cst_15 = arith.constant dense<0.000000e+00> : vector<8x8xf32>
    %25 = tpu.matmul %23, %24, %cst_15 {dimension_numbers = #tpu.dot_dimension_numbers<[1], [0], [0], [1], [0, 0, 1, 1], [], []>} : vector<8x8xbf16>, vector<8x8xbf16>, vector<8x8xf32> -> vector<8x8xf32>
    %cst_16 = arith.constant 1.000000e-30 : f32
    %26 = vector.broadcast %cst_16 : f32 to vector<8x8xf32>
    %27 = arith.maximumf %25, %26 : vector<8x8xf32>
    %28 = tpu.reciprocal %27 {approx = true} : vector<8x8xf32> -> vector<8x8xf32>
    %29 = arith.mulf %22, %28 : vector<8x8xf32>
    %30 = arith.truncf %29 : vector<8x8xf32> to vector<8x8xbf16>
    %c0_17 = arith.constant 0 : index
    %c0_18 = arith.constant 0 : index
    %c0_19 = arith.constant 0 : index
    %31 = vector.load %arg7[%c0_17, %c0_18, %c0_19] : memref<2x8x128xbf16, #tpu.memory_space<vmem>>, vector<1x8x128xbf16>
    %32 = vector.shape_cast %31 : vector<1x8x128xbf16> to vector<8x128xbf16>
    %cst_20 = arith.constant dense<0.000000e+00> : vector<8x128xf32>
    %33 = tpu.matmul %30, %32, %cst_20 {dimension_numbers = #tpu.dot_dimension_numbers<[1], [0], [0], [1], [0, 0, 1, 1], [], []>} : vector<8x8xbf16>, vector<8x128xbf16>, vector<8x128xf32> -> vector<8x128xf32>
    %34 = arith.mulf %33, %16 : vector<8x128xf32>
    %35 = arith.truncf %34 : vector<8x128xf32> to vector<8x128xbf16>
    %c0_21 = arith.constant 0 : index
    %c0_22 = arith.constant 0 : index
    %c0_23 = arith.constant 0 : index
    %36 = vector.load %arg8[%c0_21, %c0_22, %c0_23] : memref<2x128x128xbf16, #tpu.memory_space<vmem>>, vector<1x128x128xbf16>
    %37 = vector.shape_cast %36 : vector<1x128x128xbf16> to vector<128x128xbf16>
    %cst_24 = arith.constant dense<0.000000e+00> : vector<8x128xf32>
    %38 = tpu.matmul %35, %37, %cst_24 {dimension_numbers = #tpu.dot_dimension_numbers<[1], [0], [0], [1], [0, 0, 1, 1], [], []>} : vector<8x128xbf16>, vector<128x128xbf16>, vector<8x128xf32> -> vector<8x128xf32>
    %c1 = arith.constant 1 : index
    %c0_25 = arith.constant 0 : index
    %c0_26 = arith.constant 0 : index
    %39 = vector.load %arg7[%c1, %c0_25, %c0_26] : memref<2x8x128xbf16, #tpu.memory_space<vmem>>, vector<1x8x128xbf16>
    %40 = vector.shape_cast %39 : vector<1x8x128xbf16> to vector<8x128xbf16>
    %cst_27 = arith.constant dense<0.000000e+00> : vector<8x128xf32>
    %41 = tpu.matmul %30, %40, %cst_27 {dimension_numbers = #tpu.dot_dimension_numbers<[1], [0], [0], [1], [0, 0, 1, 1], [], []>} : vector<8x8xbf16>, vector<8x128xbf16>, vector<8x128xf32> -> vector<8x128xf32>
    %42 = arith.mulf %41, %16 : vector<8x128xf32>
    %43 = arith.truncf %42 : vector<8x128xf32> to vector<8x128xbf16>
    %c1_28 = arith.constant 1 : index
    %c0_29 = arith.constant 0 : index
    %c0_30 = arith.constant 0 : index
    %44 = vector.load %arg8[%c1_28, %c0_29, %c0_30] : memref<2x128x128xbf16, #tpu.memory_space<vmem>>, vector<1x128x128xbf16>
    %45 = vector.shape_cast %44 : vector<1x128x128xbf16> to vector<128x128xbf16>
    %cst_31 = arith.constant dense<0.000000e+00> : vector<8x128xf32>
    %46 = tpu.matmul %43, %45, %cst_31 {dimension_numbers = #tpu.dot_dimension_numbers<[1], [0], [0], [1], [0, 0, 1, 1], [], []>} : vector<8x128xbf16>, vector<128x128xbf16>, vector<8x128xf32> -> vector<8x128xf32>
    %47 = arith.addf %38, %46 : vector<8x128xf32>
    %c0_32 = arith.constant 0 : index
    %c0_33 = arith.constant 0 : index
    %48 = vector.load %arg9[%c0_32, %c0_33] : memref<8x128xf32, #tpu.memory_space<vmem>>, vector<8x128xf32>
    tpu.vector_store %arg9[%c0_32, %c0_33], %47 {strides = array<i32>} : memref<8x128xf32, #tpu.memory_space<vmem>>, vector<8x128xf32>,
    return
  }
  func.func @transform_0(%arg0: i32) -> (i32, i32) {
    %c0_i32 = arith.constant 0 : i32
    %c0_i32_0 = arith.constant 0 : i32
    return %arg0, %c0_i32 : i32, i32
  }
  func.func @transform_1(%arg0: i32) -> (i32, i32) {
    %c0_i32 = arith.constant 0 : i32
    %c0_i32_0 = arith.constant 0 : i32
    %c0_i32_1 = arith.constant 0 : i32
    return %c0_i32, %c0_i32_0 : i32, i32
  }
  func.func @transform_2(%arg0: i32) -> (i32, i32) {
    %c0_i32 = arith.constant 0 : i32
    %c0_i32_0 = arith.constant 0 : i32
    %c0_i32_1 = arith.constant 0 : i32
    return %c0_i32, %c0_i32_0 : i32, i32
  }
  func.func @transform_3(%arg0: i32) -> (i32, i32) {
    %c0_i32 = arith.constant 0 : i32
    %c0_i32_0 = arith.constant 0 : i32
    %c0_i32_1 = arith.constant 0 : i32
    return %c0_i32, %c0_i32_0 : i32, i32
  }
  func.func @transform_4(%arg0: i32) -> (i32, i32) {
    %c0_i32 = arith.constant 0 : i32
    %c0_i32_0 = arith.constant 0 : i32
    %c0_i32_1 = arith.constant 0 : i32
    return %c0_i32, %c0_i32_0 : i32, i32
  }
  func.func @transform_5(%arg0: i32) -> (i32, i32) {
    %c0_i32 = arith.constant 0 : i32
    %c0_i32_0 = arith.constant 0 : i32
    %c0_i32_1 = arith.constant 0 : i32
    return %c0_i32, %c0_i32_0 : i32, i32
  }
  func.func @transform_6(%arg0: i32) -> (i32, i32, i32) {
    %c0_i32 = arith.constant 0 : i32
    %c0_i32_0 = arith.constant 0 : i32
    %c0_i32_1 = arith.constant 0 : i32
    %c0_i32_2 = arith.constant 0 : i32
    return %c0_i32, %c0_i32_0, %c0_i32_1 : i32, i32, i32
  }
  func.func @transform_7(%arg0: i32) -> (i32, i32, i32) {
    %c0_i32 = arith.constant 0 : i32
    %c0_i32_0 = arith.constant 0 : i32
    %c0_i32_1 = arith.constant 0 : i32
    %c0_i32_2 = arith.constant 0 : i32
    return %c0_i32, %c0_i32_0, %c0_i32_1 : i32, i32, i32
  }
  func.func @transform_8(%arg0: i32) -> (i32, i32) {
    %c0_i32 = arith.constant 0 : i32
    %c0_i32_0 = arith.constant 0 : i32
    return %arg0, %c0_i32 : i32, i32
  }
}

</mosaic_0001>

<bundles_post_ra>
// kernel: tpu_custom_call.1
= control target key start
LH: loop header
LB: loop body
LE: loop exit
PB: predicated region body
PF: predicated region fallthrough
CT: control target
= control target key end

     0   :  { %vm62_vm0 = vcmask 261120   ;;  %s1120_s0 = inlined_call_operand.vmem [shape: bf16[8,32], index: 0, kind: input, shape index: {}]   ;;  %s1121_s1 = inlined_call_operand.vmem [shape: bf16[32,192], index: 1, kind: input, shape index: {}]   ;;  %s1122_s2 = inlined_call_operand.vmem [shape: f32[1,192], index: 2, kind: input, shape index: {}]   ;;  %s1123_s3 = inlined_call_operand.vmem [shape: bf16[192,136], index: 3, kind: input, shape index: {}]   ;;  %s1124_s4 = inlined_call_operand.vmem [shape: f32[1,136], index: 4, kind: input, shape index: {}]   ;;  %s1125_s5 = inlined_call_operand.vmem [shape: bf16[8,8], index: 5, kind: input, shape index: {}]   ;;  %s1126_s6 = inlined_call_operand.vmem [shape: bf16[2,8,128], index: 6, kind: input, shape index: {}]   ;;  %s1127_s7 = inlined_call_operand.vmem [shape: bf16[2,128,128], index: 7, kind: input, shape index: {}]   ;;  %s1128_s8 = inlined_call_operand.hbm [shape: f32[8,128], index: 8, kind: output, shape index: {}]  }
   0x1   :  { %v560_v0 = vld [vmem:[%s1121_s1 + $0x10] sm:$0xf]  ;;  %v753_v1 = vld [vmem:[%s1121_s1 + $0x14] sm:$0xf0]  ;;  %v552_v2 = vld [vmem:[%s1121_s1] sm:$0xf] }
   0x2   :  { %v561_v3 = vor.u32 %v753_v1, %v560_v0  ;;  %v751_v4 = vld [vmem:[%s1121_s1 + $0x4] sm:$0xf0]  ;;  %v752_v5 = vld [vmem:[%s1121_s1 + $0x14] sm:$0xf]  ;;  %v562_v6 = vld [vmem:[%s1121_s1 + $0x18] sm:$0xf0] }
   0x3   :  { %v553_v7 = vor.u32 %v751_v4, %v552_v2  ;;  %v750_v8 = vld [vmem:[%s1121_s1 + $0x4] sm:$0xf]  ;;  %v554_v9 = vld [vmem:[%s1121_s1 + $0x8] sm:$0xf0]  ;;  %v626_v10 = vld [vmem:[%s1123_s3 + $0x70] sm:$0xf]  ;;  %v565_v12 = vor.u32 %v752_v5, %v562_v6 }
   0x4   :  { %72 = vmatpush.bf16.msra.mxu1 %v561_v3  ;;  %v769_v11 = vld [vmem:[%s1123_s3 + $0x74] sm:$0xf0]  ;;  %v768_v14 = vld [vmem:[%s1123_s3 + $0x74] sm:$0xf]  ;;  %v628_v15 = vld [vmem:[%s1123_s3 + $0x78] sm:$0xf0]  ;;  %v557_v26 = vor.u32 %v750_v8, %v554_v9 }
   0x5   :  { %v627_v13 = vor.u32 %v769_v11, %v626_v10  ;;  %v618_v16 = vld [vmem:[%s1123_s3 + $0x60] sm:$0xf]  ;;  %v631_v17 = vor.u32 %v768_v14, %v628_v15  ;;  %v767_v18 = vld [vmem:[%s1123_s3 + $0x64] sm:$0xf0]  ;;  %v766_v19 = vld [vmem:[%s1123_s3 + $0x64] sm:$0xf] }
   0x6   :  { %v620_v20 = vld [vmem:[%s1123_s3 + $0x68] sm:$0xf0]  ;;  %v31_v21 = vld [vmem:[%s1120_s0] sm:$0xf]  ;;  %v619_v22 = vor.u32 %v767_v18, %v618_v16  ;;  %v610_v24 = vld [vmem:[%s1123_s3 + $0x50] sm:$0xf] }
   0x7   :  { %250 = vmatpush.bf16.msra.mxu2 %v627_v13  ;;  %276 = vmatpush.bf16.msra.mxu0 %v631_v17  ;;  %v623_v23 = vor.u32 %v766_v19, %v620_v20  ;;  %v765_v25 = vld [vmem:[%s1123_s3 + $0x54] sm:$0xf0]  ;;  %v764_v27 = vld [vmem:[%s1123_s3 + $0x54] sm:$0xf]  ;;  %v612_v28 = vld [vmem:[%s1123_s3 + $0x58] sm:$0xf0] }
   0x8   :  { %73 = vmatpush.bf16.msra.mxu1 %v553_v7  ;;  %v611_v29 = vor.u32 %v765_v25, %v610_v24  ;;  %v615_v30 = vor.u32 %v764_v27, %v612_v28  ;;  %v602_v31 = vld [vmem:[%s1123_s3 + $0x40] sm:$0xf]  ;;  %v763_v32 = vld [vmem:[%s1123_s3 + $0x44] sm:$0xf0] }
   0xb   :  { %566 = vmatmul.msk.bf16.vlgmr.msra.gmra.mxu1 %vm62_vm0, %v31_v21  ;;  %251 = vmatpush.bf16.msra.mxu2 %v619_v22 }
   0xc   :  { %85 = vmatpush.bf16.msrb.mxu1 %v565_v12  ;;  %277 = vmatpush.bf16.msra.mxu0 %v623_v23 }
   0xd   :  { %13 = vsyncpa [#allocation3], 0  ;;  %v762_v33 = vld [vmem:[%s1123_s3 + $0x44] sm:$0xf]  ;;  %v604_v34 = vld [vmem:[%s1123_s3 + $0x48] sm:$0xf0]  ;;  %v603_v35 = vor.u32 %v763_v32, %v602_v31 }
   0xe   :  { %v607_v36 = vor.u32 %v762_v33, %v604_v34  ;;  %v594_v37 = vld [vmem:[%s1123_s3 + $0x30] sm:$0xf]  ;;  %v761_v38 = vld [vmem:[%s1123_s3 + $0x34] sm:$0xf0]  ;;  %v760_v39 = vld [vmem:[%s1123_s3 + $0x34] sm:$0xf] }
   0xf   :  { %252 = vmatpush.bf16.msra.mxu2 %v611_v29  ;;  %v596_v40 = vld [vmem:[%s1123_s3 + $0x38] sm:$0xf0]  ;;  %v595_v41 = vor.u32 %v761_v38, %v594_v37  ;;  %v586_v43 = vld [vmem:[%s1123_s3 + $0x20] sm:$0xf]  ;;  %v759_v44 = vld [vmem:[%s1123_s3 + $0x24] sm:$0xf0] }
  0x10   :  { %86 = vmatpush.bf16.msrb.mxu1 %v557_v26  ;;  %278 = vmatpush.bf16.msra.mxu0 %v615_v30  ;;  %v599_v42 = vor.u32 %v760_v39, %v596_v40  ;;  %v758_v45 = vld [vmem:[%s1123_s3 + $0x24] sm:$0xf]  ;;  %v588_v46 = vld [vmem:[%s1123_s3 + $0x28] sm:$0xf0]  ;;  %v587_v47 = vor.u32 %v759_v44, %v586_v43  ;;  %v578_v49 = vld [vmem:[%s1123_s3 + $0x10] sm:$0xf] }
  0x11   :  { %v591_v48 = vor.u32 %v758_v45, %v588_v46  ;;  %v757_v50 = vld [vmem:[%s1123_s3 + $0x14] sm:$0xf0]  ;;  %v756_v51 = vld [vmem:[%s1123_s3 + $0x14] sm:$0xf]  ;;  %v580_v53 = vld [vmem:[%s1123_s3 + $0x18] sm:$0xf0] }
  0x12   :  { %v579_v52 = vor.u32 %v757_v50, %v578_v49  ;;  %v583_v54 = vor.u32 %v756_v51, %v580_v53  ;;  %v570_v55 = vld [vmem:[%s1123_s3] sm:$0xf]  ;;  %v755_v56 = vld [vmem:[%s1123_s3 + $0x4] sm:$0xf0]  ;;  %v754_v57 = vld [vmem:[%s1123_s3 + $0x4] sm:$0xf] }
  0x13   :  { %253 = vmatpush.bf16.msra.mxu2 %v603_v35  ;;  %v571_v58 = vor.u32 %v755_v56, %v570_v55  ;;  %v572_v59 = vld [vmem:[%s1123_s3 + $0x8] sm:$0xf0]  ;;  %v776_v61 = vld [vmem:[%s1123_s3 + $0xb4] sm:$0xf]  ;;  %v660_v62 = vld [vmem:[%s1123_s3 + $0xb8] sm:$0xf0] }
  0x14   :  { %279 = vmatpush.bf16.msra.mxu0 %v607_v36  ;;  %v575_v60 = vor.u32 %v754_v57, %v572_v59  ;;  %v658_v63 = vld [vmem:[%s1123_s3 + $0xb0] sm:$0xf]  ;;  %v663_v0 = vor.u32 %v776_v61, %v660_v62  ;;  %v777_v1 = vld [vmem:[%s1123_s3 + $0xb4] sm:$0xf0]  ;;  %v774_v3 = vld [vmem:[%s1123_s3 + $0xa4] sm:$0xf] }
  0x15   :  { %v659_v2 = vor.u32 %v777_v1, %v658_v63  ;;  %v652_v4 = vld [vmem:[%s1123_s3 + $0xa8] sm:$0xf0]  ;;  %v650_v5 = vld [vmem:[%s1123_s3 + $0xa0] sm:$0xf]  ;;  %v775_v7 = vld [vmem:[%s1123_s3 + $0xa4] sm:$0xf0] }
  0x16   :  { %293 = vmatpush.bf16.msra.mxu1 %v663_v0  ;;  %v655_v6 = vor.u32 %v774_v3, %v652_v4  ;;  %v772_v8 = vld [vmem:[%s1123_s3 + $0x94] sm:$0xf]  ;;  %v644_v9 = vld [vmem:[%s1123_s3 + $0x98] sm:$0xf0]  ;;  %v651_v10 = vor.u32 %v775_v7, %v650_v5  ;;  %v642_v12 = vld [vmem:[%s1123_s3 + $0x90] sm:$0xf] }
  0x17   :  { %254 = vmatpush.bf16.msra.mxu2 %v595_v41  ;;  %267 = vmatpush.bf16.msra.mxu3 %v659_v2  ;;  %v647_v11 = vor.u32 %v772_v8, %v644_v9  ;;  %v773_v13 = vld [vmem:[%s1123_s3 + $0x94] sm:$0xf0]  ;;  %v770_v15 = vld [vmem:[%s1123_s3 + $0x84] sm:$0xf]  ;;  %v636_v16 = vld [vmem:[%s1123_s3 + $0x88] sm:$0xf0] }
  0x18   :  { %280 = vmatpush.bf16.msra.mxu0 %v599_v42  ;;  %v643_v14 = vor.u32 %v773_v13, %v642_v12  ;;  %v634_v17 = vld [vmem:[%s1123_s3 + $0x80] sm:$0xf]  ;;  %v639_v18 = vor.u32 %v770_v15, %v636_v16  ;;  %v771_v19 = vld [vmem:[%s1123_s3 + $0x84] sm:$0xf0]  ;;  %vm246_vm1 = vcmask 523264   ;;  %vm315_vm2 = vcmask 1043456  }
  0x19   :  { %v635_v20 = vor.u32 %v771_v19, %v634_v17  ;;  %v311_v34 = vld [vmem:[%s1125_s5] sm:$0xf]  ;;  %vm303_vm3 = vcmask 64512   ;;  %v785_v61 = vld [vmem:[%s1127_s7 + $0x38] sm:$0xff]  ;;  %v784_v63 = vld [vmem:[%s1127_s7 + $0x30] sm:$0xff]  ;;  %s825_s9 = smov [#allocation2]  }
  0x1a   :  { %294 = vmatpush.bf16.msra.mxu1 %v655_v6  ;;  %v317_v35 = vsel %vm315_vm2, %v311_v34, 0  ;;  %v120_v38 = vld [vmem:[%s1124_s4] sm:$0x3]  ;;  %v793_v62 = vld [vmem:[%s1127_s7 + $0x78] sm:$0xff]  ;;  %v792_v0 = vld [vmem:[%s1127_s7 + $0x70] sm:$0xff]  ;;  %s539_s10 = sshll.u32 %s825_s9, 4  ;;  %s540_s10 = int_to_ptr.vmem [resolvable:$true] %s539_s10 }
  0x1b   :  { %567 = vmatmul.msk.bf16.vlgmr.msrb.gmra.mxu1 %vm62_vm0, %v31_v21  ;;  %255 = vmatpush.bf16.msra.mxu2 %v587_v47  ;;  %v36_v21 = vld [vmem:[%s1122_s2] sm:$0x3]  ;;  %v123_v40 = vperm.slane %v120_v38, 1  ;;  %v122_v44 = vperm.slane %v120_v38, 0  ;;  %v783_v1 = vld [vmem:[%s1127_s7 + $0x28] sm:$0xff]  ;;  %v781_v5 = vld [vmem:[%s1127_s7 + $0x18] sm:$0xff] }
  0x1c   :  { %281 = vmatpush.bf16.msra.mxu0 %v591_v48  ;;  %268 = vmatpush.bf16.msra.mxu3 %v651_v10  ;;  %v38_v22 = vperm.slane %v36_v21, 0  ;;  %v39_v28 = vperm.slane %v36_v21, 1  ;;  %v336_v59 = vld [vmem:[%s1126_s6] sm:$0xf]  ;;  %v791_v2 = vld [vmem:[%s1127_s7 + $0x68] sm:$0xff]  ;;  %v789_v6 = vld [vmem:[%s1127_s7 + $0x58] sm:$0xff] }
  0x1d   :  { %v782_v3 = vld [vmem:[%s1127_s7 + $0x20] sm:$0xff]  ;;  %v780_v8 = vld [vmem:[%s1127_s7 + $0x10] sm:$0xff]  ;;  %v779_v10 = vld [vmem:[%s1127_s7 + $0x8] sm:$0xff] }
  0x1e   :  { %295 = vmatpush.bf16.msra.mxu1 %v647_v11  ;;  %v790_v4 = vld [vmem:[%s1127_s7 + $0x60] sm:$0xff]  ;;  %v788_v15 = vld [vmem:[%s1127_s7 + $0x50] sm:$0xff]  ;;  %v787_v17 = vld [vmem:[%s1127_s7 + $0x48] sm:$0xff] }
  0x1f   :  { %256 = vmatpush.bf16.msra.mxu2 %v579_v52  ;;  %v668_v52 = vld [vmem:[%s1126_s6 + $0x4] sm:$0xf] }
  0x20   :  { %282 = vmatpush.bf16.msra.mxu0 %v583_v54  ;;  %269 = vmatpush.bf16.msra.mxu3 %v643_v14  ;;  %v377_v53 = vsel %vm315_vm2, %v668_v52, 0  ;;  %v778_v16 = vld [vmem:[%s1127_s7] sm:$0xff] }
  0x22   :  { %296 = vmatpush.bf16.msra.mxu1 %v639_v18  ;;  %v786_v18 = vld [vmem:[%s1127_s7 + $0x40] sm:$0xff]  ;;  %s541_s7 = sshll.u32 %s1128_s8, 4  ;;  %s542_s7 = int_to_ptr.hbm [resolvable:$true] %s541_s7 }
  0x23   :  { %257 = vmatpush.bf16.msra.mxu2 %v571_v58 }
  0x24   :  { %283 = vmatpush.bf16.msra.mxu0 %v575_v60  ;;  %270 = vmatpush.bf16.msra.mxu3 %v635_v20  ;;  %v341_v60 = vsel %vm315_vm2, %v336_v59, 0 }
  0x26   :  { %350 = vmatpush.bf16.msrb.mxu1 %v341_v60 }
  0x27   :  { %386 = vmatpush.bf16.msrb.mxu2 %v377_v53 }
  0x28   :  { %326 = vmatpush.bf16.msrb.mxu3 %v317_v35  ;;  %520 = vmatpush.bf16.msrb.mxu0 %v785_v61 }
  0x2c   :  { %521 = vmatpush.bf16.msrb.mxu0 %v784_v63 }
  0x30   :  { %522 = vmatpush.bf16.msrb.mxu0 %v783_v1 }
  0x34   :  { %523 = vmatpush.bf16.msrb.mxu0 %v782_v3 }
  0x38   :  { %524 = vmatpush.bf16.msrb.mxu0 %v781_v5 }
  0x3c   :  { %525 = vmatpush.bf16.msrb.mxu0 %v780_v8 }
  0x40   :  { %526 = vmatpush.bf16.msrb.mxu0 %v779_v10 }
  0x44   :  { %527 = vmatpush.bf16.msrb.mxu0 %v778_v16 }
  0x88   :  { %v75_v23 = vpop.f32.mrf.mxu1 }
  0x89   :  { %v76_v24 = vadd.f32 %v75_v23, %v38_v22 }
  0x8b   :  { %v92_v25 = vmax.f32 %v76_v24, 0.0 }
  0x8d   :  { %v94_v26 = vpack.c.bf16 %v92_v25, %v92_v25 }
  0x8f   :  { %258 = vmatmul.bf16.vlgmr.msra.gmra.mxu2 %v94_v26  ;;  %284 = vmatmul.bf16.vlgmr.msra.gmra.mxu0 %v94_v26 }
  0x90   :  { %v77_v27 = vpop.f32.mrf.mxu1 }
  0x98   :  { %v88_v29 = vpop.f32.mrf.mxu1 }
  0x99   :  { %v89_v30 = vadd.f32 %v88_v29, %v39_v28 }
  0x9b   :  { %v93_v31 = vmax.f32 %v89_v30, 0.0 }
  0x9d   :  { %v95_v32 = vpack.c.bf16 %v93_v31, %v93_v31 }
  0x9f   :  { %664 = vmatmul.msk.bf16.vlgmr.msra.gmra.mxu3 %vm246_vm1, %v95_v32  ;;  %665 = vmatmul.msk.bf16.vlgmr.msra.gmra.mxu1 %vm246_vm1, %v95_v32 }
  0xa0   :  { %v90_v33 = vpop.f32.mrf.mxu1  ;;  %459 = vmatpush.bf16.msra.mxu3 %v793_v62 }
  0xa4   :  { %460 = vmatpush.bf16.msra.mxu3 %v792_v0 }
  0xa8   :  { %461 = vmatpush.bf16.msra.mxu3 %v791_v2 }
  0xac   :  { %462 = vmatpush.bf16.msra.mxu3 %v790_v4 }
  0xb0   :  { %463 = vmatpush.bf16.msra.mxu3 %v789_v6 }
  0xb4   :  { %464 = vmatpush.bf16.msra.mxu3 %v788_v15 }
  0xb8   :  { %465 = vmatpush.bf16.msra.mxu3 %v787_v17 }
  0xbc   :  { %466 = vmatpush.bf16.msra.mxu3 %v786_v18 }
 0x10c   :  { %v285_v36 = vpop.f32.mrf.mxu0 }
 0x10d   :  { %v286_v42 = vadd.f32 %v285_v36, %v123_v40 }
 0x112   :  { %v259_v37 = vpop.f32.mrf.mxu2 }
 0x113   :  { %v260_v47 = vadd.f32 %v259_v37, %v122_v44 }
 0x114   :  { %v287_v39 = vpop.f32.mrf.mxu0 }
 0x11a   :  { %v261_v41 = vpop.f32.mrf.mxu2 }
 0x11c   :  { %v298_v43 = vpop.f32.mrf.mxu1 }
 0x11d   :  { %v299_v45 = vadd.f32 %v298_v43, %v286_v42 }
 0x11f   :  { %v304_v46 = vsel %vm303_vm3, %v299_v45, -inf }
 0x120   :  { %305 = vmax.xlane.f32.xlu0 %v304_v46 }
 0x122   :  { %v272_v48 = vpop.f32.mrf.mxu3 }
 0x123   :  { %v1055_v49 = vadd.f32 %v272_v48, %v260_v47 }
 0x124   :  { %v300_v50 = vpop.f32.mrf.mxu1 }
 0x125   :  { %v302_v19 = vmax.f32 %v1055_v49, 0.0 }
 0x12a   :  { %v274_v51 = vpop.f32.mrf.mxu3 }
 0x193   :  { %v306_v54 = vpop.xlane.xlu0 %305 }
 0x194   :  { %v307_v55 = vsub.f32 %v299_v45, %v306_v54 }
 0x196   :  { %v308_v56 = vmul.f32 1.442695, %v307_v55 }
 0x198   :  { %795 = vpow2.f32 %v308_v56 }
 0x19e   :  { %v796_v57 = vpop.eup %795 }
 0x19f   :  { %v310_v58 = vpack.c.bf16 %v796_v57, %v796_v57 }
 0x1a1   :  { %666 = vmatmul.msk.bf16.vlgmr.msrb.gmra.mxu3 %vm303_vm3, %v310_v58 }
 0x224   :  { %v328_v7 = vpop.f32.mrf.mxu3 }
 0x225   :  { %v332_v9 = vmax.f32 %v328_v7, 1e-30 }
 0x227   :  { %797 = vrcp.f32 %v332_v9 }
 0x22c   :  { %v330_v11 = vpop.f32.mrf.mxu3 }
 0x22d   :  { %v798_v12 = vpop.eup %797 }
 0x22e   :  { %v334_v13 = vmul.f32 %v798_v12, %v796_v57 }
 0x230   :  { %v335_v14 = vpack.c.bf16 %v334_v13, %v334_v13 }
 0x232   :  { %667 = vmatmul.msk.bf16.vlgmr.msrb.gmra.mxu1 %vm303_vm3, %v335_v14  ;;  %669 = vmatmul.msk.bf16.vlgmr.msrb.gmra.mxu2 %vm303_vm3, %v335_v14 }
 0x2af   :  { %v352_v20 = vpop.f32.mrf.mxu1 }
 0x2b0   :  { %v356_v21 = vmul.f32 %v352_v20, %v302_v19 }
 0x2b2   :  { %v357_v22 = vpack.c.bf16 %v356_v21, %v356_v21 }
 0x2b4   :  { %528 = vmatmul.bf16.vlgmr.msrb.gmra.mxu0 %v357_v22 }
 0x2b5   :  { %v388_v23 = vpop.f32.mrf.mxu2 }
 0x2b6   :  { %v392_v24 = vmul.f32 %v388_v23, %v302_v19 }
 0x2b7   :  { %v354_v25 = vpop.f32.mrf.mxu1 }
 0x2b8   :  { %v393_v26 = vpack.c.bf16 %v392_v24, %v392_v24 }
 0x2ba   :  { %467 = vmatmul.bf16.vlgmr.msra.gmra.mxu3 %v393_v26 }
 0x2bd   :  { %v390_v27 = vpop.f32.mrf.mxu2 }
 0x331   :  { %v529_v28 = vpop.f32.mrf.mxu0 }
 0x339   :  { %v531_v29 = vpop.f32.mrf.mxu0 }
 0x33d   :  { %v468_v30 = vpop.f32.mrf.mxu3 }
 0x33e   :  { %v530_v31 = vadd.f32 %v529_v28, %v468_v30 }
 0x340   :  { %533 = vst [vmem:[#allocation2] sm:$0xff] %v530_v31 }
 0x341   :  { %544 = dma.vmem_to_hbm [thread:$0]  %s540_s10, 128, %s542_s7, [#allocation3]  }
 0x345   :  { %v470_v32 = vpop.f32.mrf.mxu3 }
 0x346   :  { %823 = dma.done.wait [#allocation3], 128  }
 0x347   :  { %824 = vsyncadd [#allocation3], 4294967168 }
 0x348   :  { %549 = vsyncpa [#allocation3], 1 }

</bundles_post_ra>
